<compile_context>
chip_gen: v7x
topology: tpu7x:2x2x1
jax: 0.10.0
libtpu: 0.0.40
codegen_flags: <defaults>
</compile_context>

<pallas_src>
import jax
import jax.numpy as jnp
from jax.experimental import pallas as pl
from jax.experimental.pallas import tpu as pltpu

# ------------------- small synthetic shapes -------------------
B = 2          # batch
C_IN = 4       # latent channels of x
C_HINT = 3     # hint channels
C_XH = 8       # C_IN + C_HINT padded up to 8 (sublane-friendly K)
H = W = 16
HW = H * W     # 256  -> lane-dense last dim (2 x 128)
S = 8          # context sequence length
D = 32         # context hidden dim
C_MODEL = 32   # model width
C_OUT = 4      # unet output channels (same as latent)
N_CTRL = 3     # number of control tensors produced by the control model


# ------------------- fused Pallas kernel -------------------

def _union_fused_kernel(
    t_ref, scales_ref,                                   # SMEM scalars
    xh_ref, ctx_ref,                                     # per-batch activations
    cwxh_ref, cb_ref, cwt_ref, cwctx_ref, cbemb_ref,     # control-model weights
    cwh_ref, cbh_ref,                                    # control heads (transposed)
    uwx_ref, ub_ref, uwt_ref, uwctx_ref, ubemb_ref,      # unet weights
    uwo_ref, ubo_ref,                                    # unet out projection
    o_ref):
    """One grid step = one batch element; everything stays in VMEM/vregs."""
    i = pl.program_id(0)
    tval = t_ref[i]                                      # scalar timestep

    xh = xh_ref[0]                                       # (C_XH, HW)  channel-major
    ctx_mean = jnp.mean(ctx_ref[0], axis=1, keepdims=True)   # (D, 1)

    # ---- control model: time/context embedding + trunk ----
    emb_c = (tval * cwt_ref[...] + cbemb_ref[...]
             + jnp.dot(cwctx_ref[...], ctx_mean,
                       preferred_element_type=jnp.float32))          # (C_MODEL, 1)
    h_c = jnp.dot(cwxh_ref[...], xh, preferred_element_type=jnp.float32)
    h_c = jnp.maximum(h_c + cb_ref[...] + emb_c, 0.0)                # (C_MODEL, HW)

    # ---- control heads with control_scales folded into the weights ----
    # Only the scaled SUM of the controls feeds the unet trunk, so
    # sum_k s_k*(W_k^T @ h + b_k) == (sum_k s_k W_k^T) @ h + sum_k s_k b_k.
    w_sum = scales_ref[0] * cwh_ref[0]
    b_sum = scales_ref[0] * cbh_ref[0]
    for k in range(1, N_CTRL):
        w_sum = w_sum + scales_ref[k] * cwh_ref[k]
        b_sum = b_sum + scales_ref[k] * cbh_ref[k]
    csum = jnp.dot(w_sum, h_c, preferred_element_type=jnp.float32) + b_sum  # (C_MODEL, HW)

    # ---- unet model: embedding + trunk (+ control injection) + out projection ----
    emb_u = (tval * uwt_ref[...] + ubemb_ref[...]
             + jnp.dot(uwctx_ref[...], ctx_mean,
                       preferred_element_type=jnp.float32))          # (C_MODEL, 1)
    h_u = jnp.dot(uwx_ref[...], xh, preferred_element_type=jnp.float32)
    h_u = jnp.maximum(h_u + ub_ref[...] + emb_u + csum, 0.0)         # (C_MODEL, HW)

    o_ref[0] = (jnp.dot(uwo_ref[...], h_u, preferred_element_type=jnp.float32)
                + ubo_ref[...])                                       # (C_OUT, HW)


# ------------------- wrapper -------------------

def union_block_forward(p, x, hint, t, context, control_scales):
    """Pallas equivalent of UnionBlockPT.forward (save_sample=False path)."""
    # TODO(synk): the save_sample .npz dumping branches are host file-I/O side
    #             effects with no Pallas equivalent; intentionally omitted.

    # ---- layout prep (cheap, one-time; keeps NCHW memory order = channel-major) ----
    x_cm = x.reshape(B, C_IN, HW)
    hint_cm = hint.reshape(B, C_HINT, HW)
    pad = jnp.zeros((B, C_XH - C_IN - C_HINT, HW), jnp.float32)
    xh_cm = jnp.concatenate([x_cm, hint_cm, pad], axis=1)            # (B, 8, HW)
    ctx_t = jnp.transpose(context, (0, 2, 1))                        # (B, D, S) tiny
    t_arr = t.astype(jnp.float32).reshape(B)
    scales = jnp.asarray(control_scales, jnp.float32)

    # ---- weights in channel-major (transposed) form ----
    zpad_h = jnp.zeros((C_XH - C_IN - C_HINT, C_MODEL), jnp.float32)
    cwxh = jnp.concatenate([p["ctrl_wx"], p["ctrl_wh"], zpad_h], axis=0).T   # (C_MODEL, 8)
    zpad_u = jnp.zeros((C_XH - C_IN, C_MODEL), jnp.float32)
    uwx = jnp.concatenate([p["unet_wx"], zpad_u], axis=0).T                  # (C_MODEL, 8)

    cb_col, cwt_col, cbemb_col = p["ctrl_b"].T, p["ctrl_wt"].T, p["ctrl_bemb"].T
    cwctx_t = p["ctrl_wctx"].T                                               # (C_MODEL, D)
    cwh_t = jnp.transpose(p["ctrl_w_heads"], (0, 2, 1))                      # (N, C, C)
    cbh_col = jnp.transpose(p["ctrl_b_heads"], (0, 2, 1))                    # (N, C, 1)
    ub_col, uwt_col, ubemb_col = p["unet_b"].T, p["unet_wt"].T, p["unet_bemb"].T
    uwctx_t = p["unet_wctx"].T
    uwo_t, ubo_col = p["unet_wo"].T, p["unet_bo"].T                          # (C_OUT,C), (C_OUT,1)

    full2 = lambda i: (0, 0)
    full3 = lambda i: (0, 0, 0)
    out = pl.pallas_call(
        _union_fused_kernel,
        out_shape=jax.ShapeDtypeStruct((B, C_OUT, HW), jnp.float32),
        grid=(B,),
        in_specs=[
            pl.BlockSpec(memory_space=pltpu.MemorySpace.SMEM),               # t
            pl.BlockSpec(memory_space=pltpu.MemorySpace.SMEM),               # scales
            pl.BlockSpec((1, C_XH, HW), lambda i: (i, 0, 0)),                # xh
            pl.BlockSpec((1, D, S), lambda i: (i, 0, 0)),                    # context^T
            pl.BlockSpec((C_MODEL, C_XH), full2),                            # cwxh
            pl.BlockSpec((C_MODEL, 1), full2),                               # ctrl_b
            pl.BlockSpec((C_MODEL, 1), full2),                               # ctrl_wt
            pl.BlockSpec((C_MODEL, D), full2),                               # ctrl_wctx^T
            pl.BlockSpec((C_MODEL, 1), full2),                               # ctrl_bemb
            pl.BlockSpec((N_CTRL, C_MODEL, C_MODEL), full3),                 # head W^T
            pl.BlockSpec((N_CTRL, C_MODEL, 1), full3),                       # head b
            pl.BlockSpec((C_MODEL, C_XH), full2),                            # uwx (padded)
            pl.BlockSpec((C_MODEL, 1), full2),                               # unet_b
            pl.BlockSpec((C_MODEL, 1), full2),                               # unet_wt
            pl.BlockSpec((C_MODEL, D), full2),                               # unet_wctx^T
            pl.BlockSpec((C_MODEL, 1), full2),                               # unet_bemb
            pl.BlockSpec((C_OUT, C_MODEL), full2),                           # unet_wo^T
            pl.BlockSpec((C_OUT, 1), full2),                                 # unet_bo
        ],
        out_specs=pl.BlockSpec((1, C_OUT, HW), lambda i: (i, 0, 0)),
        compiler_params=pltpu.CompilerParams(dimension_semantics=("parallel",)),
    )(t_arr, scales, xh_cm, ctx_t,
      cwxh, cb_col, cwt_col, cwctx_t, cbemb_col, cwh_t, cbh_col,
      uwx, ub_col, uwt_col, uwctx_t, ubemb_col, uwo_t, ubo_col)

    # Output is already channel-major == NCHW; plain reshape, no transpose.
    return out.reshape(B, C_OUT, H, W)


# ------------------- synthetic sub-models (deterministic params) -------------------

def _init_params(key):
    ks = jax.random.split(key, 15)
    sc = 0.1
    n = lambda k, shape: (jax.random.normal(k, shape, jnp.float32) * sc)
    return {
        "ctrl_wx":      n(ks[0],  (C_IN, C_MODEL)),
        "ctrl_wh":      n(ks[1],  (C_HINT, C_MODEL)),
        "ctrl_b":       n(ks[2],  (1, C_MODEL)),
        "ctrl_wt":      n(ks[3],  (1, C_MODEL)),
        "ctrl_wctx":    n(ks[4],  (D, C_MODEL)),
        "ctrl_bemb":    n(ks[5],  (1, C_MODEL)),
        "ctrl_w_heads": n(ks[6],  (N_CTRL, C_MODEL, C_MODEL)),
        "ctrl_b_heads": n(ks[7],  (N_CTRL, 1, C_MODEL)),
        "unet_wx":      n(ks[8],  (C_IN, C_MODEL)),
        "unet_b":       n(ks[9],  (1, C_MODEL)),
        "unet_wt":      n(ks[10], (1, C_MODEL)),
        "unet_wctx":    n(ks[11], (D, C_MODEL)),
        "unet_bemb":    n(ks[12], (1, C_MODEL)),
        "unet_wo":      n(ks[13], (C_MODEL, C_OUT)),
        "unet_bo":      n(ks[14], (1, C_OUT)),
    }


# ------------------- pure-JAX reference (same synthetic models, row-major math) -------------------

def _nchw_to_tokens(x, c):
    return jnp.transpose(x, (0, 2, 3, 1)).reshape(B, HW, c)


def _reference(p, x, hint, t, context, control_scales):
    x_tok = _nchw_to_tokens(x, C_IN)
    hint_tok = _nchw_to_tokens(hint, C_HINT)
    t2 = t.reshape(B, 1)
    emb_c = t2 * p["ctrl_wt"] + jnp.mean(context, 1) @ p["ctrl_wctx"] + p["ctrl_bemb"]
    h = jnp.maximum(x_tok @ p["ctrl_wx"] + hint_tok @ p["ctrl_wh"]
                    + p["ctrl_b"] + emb_c[:, None, :], 0.0)
    hf = h.reshape(B * HW, C_MODEL)
    ctrls = jnp.stack([hf @ p["ctrl_w_heads"][i] + p["ctrl_b_heads"][i]
                       for i in range(N_CTRL)], axis=0)
    scaled = ctrls * jnp.asarray(control_scales, jnp.float32)[:, None, None]
    emb_u = t2 * p["unet_wt"] + jnp.mean(context, 1) @ p["unet_wctx"] + p["unet_bemb"]
    csum = jnp.sum(scaled, axis=0).reshape(B, HW, C_MODEL)
    hu = jnp.maximum(x_tok @ p["unet_wx"] + p["unet_b"] + emb_u[:, None, :] + csum, 0.0)
    out = hu @ p["unet_wo"] + p["unet_bo"]
    return jnp.transpose(out.reshape(B, H, W, C_OUT), (0, 3, 1, 2))


if __name__ == "__main__":
    key = jax.random.PRNGKey(0)
    kx, kh, kt, kc, kp = jax.random.split(key, 5)
    x = jax.random.normal(kx, (B, C_IN, H, W), jnp.float32)
    hint = jax.random.normal(kh, (B, C_HINT, H, W), jnp.float32)
    t = jax.random.uniform(kt, (B,), jnp.float32, 0.0, 1000.0)
    context = jax.random.normal(kc, (B, S, D), jnp.float32)
    control_scales = [1.0, 0.75, 0.5]
    params = _init_params(kp)

    b_latent = union_block_forward(params, x, hint, t, context, control_scales)
    b_latent = jax.block_until_ready(b_latent)

    ref = jax.block_until_ready(_reference(params, x, hint, t, context, control_scales))
    assert b_latent.shape == (B, C_OUT, H, W), b_latent.shape
    assert jnp.allclose(b_latent, ref, atol=1e-3, rtol=1e-3), "mismatch vs reference"
    print("KERNEL_OK")
</pallas_src>

<mosaic_0001>
module attributes {stable_mosaic.version = 11 : i64} {
  func.func @_union_fused_kernel(%arg0: i32, %arg1: memref<2xf32, #tpu.memory_space<smem>>, %arg2: memref<3xf32, #tpu.memory_space<smem>>, %arg3: memref<1x8x256xf32, #tpu.memory_space<vmem>>, %arg4: memref<1x32x8xf32, #tpu.memory_space<vmem>>, %arg5: memref<32x8xf32, #tpu.memory_space<vmem>>, %arg6: memref<32x1xf32, #tpu.memory_space<vmem>>, %arg7: memref<32x1xf32, #tpu.memory_space<vmem>>, %arg8: memref<32x32xf32, #tpu.memory_space<vmem>>, %arg9: memref<32x1xf32, #tpu.memory_space<vmem>>, %arg10: memref<3x32x32xf32, #tpu.memory_space<vmem>>, %arg11: memref<3x32x1xf32, #tpu.memory_space<vmem>>, %arg12: memref<32x8xf32, #tpu.memory_space<vmem>>, %arg13: memref<32x1xf32, #tpu.memory_space<vmem>>, %arg14: memref<32x1xf32, #tpu.memory_space<vmem>>, %arg15: memref<32x32xf32, #tpu.memory_space<vmem>>, %arg16: memref<32x1xf32, #tpu.memory_space<vmem>>, %arg17: memref<4x32xf32, #tpu.memory_space<vmem>>, %arg18: memref<4x1xf32, #tpu.memory_space<vmem>>, %arg19: memref<1x4x256xf32, #tpu.memory_space<vmem>>) attributes {dimension_semantics = [#tpu.dimension_semantics<parallel>], iteration_bounds = array<i64: 2>, scalar_prefetch = 0 : i64, scratch_operands = 0 : i64, tpu.core_type = #tpu.core_type<tc>, window_params = [{transform_indices = @transform_0, window_bounds = array<i64: 2>}, {transform_indices = @transform_1, window_bounds = array<i64: 3>}, {transform_indices = @transform_2, window_bounds = array<i64: 1, 8, 256>}, {transform_indices = @transform_3, window_bounds = array<i64: 1, 32, 8>}, {pipeline_mode = #tpu.pipeline_mode<synchronous>, transform_indices = @transform_4, window_bounds = array<i64: 32, 8>}, {pipeline_mode = #tpu.pipeline_mode<synchronous>, transform_indices = @transform_5, window_bounds = array<i64: 32, 1>}, {pipeline_mode = #tpu.pipeline_mode<synchronous>, transform_indices = @transform_6, window_bounds = array<i64: 32, 1>}, {pipeline_mode = #tpu.pipeline_mode<synchronous>, transform_indices = @transform_7, window_bounds = array<i64: 32, 32>}, {pipeline_mode = #tpu.pipeline_mode<synchronous>, transform_indices = @transform_8, window_bounds = array<i64: 32, 1>}, {pipeline_mode = #tpu.pipeline_mode<synchronous>, transform_indices = @transform_9, window_bounds = array<i64: 3, 32, 32>}, {pipeline_mode = #tpu.pipeline_mode<synchronous>, transform_indices = @transform_10, window_bounds = array<i64: 3, 32, 1>}, {pipeline_mode = #tpu.pipeline_mode<synchronous>, transform_indices = @transform_11, window_bounds = array<i64: 32, 8>}, {pipeline_mode = #tpu.pipeline_mode<synchronous>, transform_indices = @transform_12, window_bounds = array<i64: 32, 1>}, {pipeline_mode = #tpu.pipeline_mode<synchronous>, transform_indices = @transform_13, window_bounds = array<i64: 32, 1>}, {pipeline_mode = #tpu.pipeline_mode<synchronous>, transform_indices = @transform_14, window_bounds = array<i64: 32, 32>}, {pipeline_mode = #tpu.pipeline_mode<synchronous>, transform_indices = @transform_15, window_bounds = array<i64: 32, 1>}, {pipeline_mode = #tpu.pipeline_mode<synchronous>, transform_indices = @transform_16, window_bounds = array<i64: 4, 32>}, {pipeline_mode = #tpu.pipeline_mode<synchronous>, transform_indices = @transform_17, window_bounds = array<i64: 4, 1>}, {transform_indices = @transform_18, window_bounds = array<i64: 1, 4, 256>}]} {
    %0 = arith.index_cast %arg0 : i32 to index
    %1 = memref.load %arg1[%0] : memref<2xf32, #tpu.memory_space<smem>>
    %c0 = arith.constant 0 : index
    %c0_0 = arith.constant 0 : index
    %c0_1 = arith.constant 0 : index
    %2 = vector.load %arg3[%c0, %c0_0, %c0_1] : memref<1x8x256xf32, #tpu.memory_space<vmem>>, vector<1x8x256xf32>
    %3 = vector.shape_cast %2 : vector<1x8x256xf32> to vector<8x256xf32>
    %c0_2 = arith.constant 0 : index
    %c0_3 = arith.constant 0 : index
    %c0_4 = arith.constant 0 : index
    %4 = vector.load %arg4[%c0_2, %c0_3, %c0_4] : memref<1x32x8xf32, #tpu.memory_space<vmem>>, vector<1x32x8xf32>
    %5 = vector.shape_cast %4 : vector<1x32x8xf32> to vector<32x8xf32>
    %cst = arith.constant dense<0.000000e+00> : vector<32xf32>
    %6 = vector.multi_reduction <add>, %5, %cst [1] : vector<32x8xf32> to vector<32xf32>
    %7 = vector.shape_cast %6 : vector<32xf32> to vector<32x1xf32>
    %cst_5 = arith.constant 8.000000e+00 : f32
    %8 = vector.broadcast %cst_5 : f32 to vector<32x1xf32>
    %9 = arith.divf %7, %8 : vector<32x1xf32>
    %c0_6 = arith.constant 0 : index
    %c0_7 = arith.constant 0 : index
    %10 = vector.load %arg7[%c0_6, %c0_7] : memref<32x1xf32, #tpu.memory_space<vmem>>, vector<32x1xf32>
    %11 = vector.broadcast %1 : f32 to vector<32x1xf32>
    %12 = arith.mulf %11, %10 : vector<32x1xf32>
    %c0_8 = arith.constant 0 : index
    %c0_9 = arith.constant 0 : index
    %13 = vector.load %arg9[%c0_8, %c0_9] : memref<32x1xf32, #tpu.memory_space<vmem>>, vector<32x1xf32>
    %14 = arith.addf %12, %13 : vector<32x1xf32>
    %c0_10 = arith.constant 0 : index
    %c0_11 = arith.constant 0 : index
    %15 = vector.load %arg8[%c0_10, %c0_11] : memref<32x32xf32, #tpu.memory_space<vmem>>, vector<32x32xf32>
    %cst_12 = arith.constant dense<0.000000e+00> : vector<32x1xf32>
    %16 = tpu.matmul %15, %9, %cst_12 {dimension_numbers = #tpu.dot_dimension_numbers<[1], [0], [0], [1], [0, 0, 1, 1], [], []>} : vector<32x32xf32>, vector<32x1xf32>, vector<32x1xf32> -> vector<32x1xf32>
    %17 = arith.addf %14, %16 : vector<32x1xf32>
    %c0_13 = arith.constant 0 : index
    %c0_14 = arith.constant 0 : index
    %18 = vector.load %arg5[%c0_13, %c0_14] : memref<32x8xf32, #tpu.memory_space<vmem>>, vector<32x8xf32>
    %cst_15 = arith.constant dense<0.000000e+00> : vector<32x256xf32>
    %19 = tpu.matmul %18, %3, %cst_15 {dimension_numbers = #tpu.dot_dimension_numbers<[1], [0], [0], [1], [0, 0, 1, 1], [], []>} : vector<32x8xf32>, vector<8x256xf32>, vector<32x256xf32> -> vector<32x256xf32>
    %c0_16 = arith.constant 0 : index
    %c0_17 = arith.constant 0 : index
    %20 = vector.load %arg6[%c0_16, %c0_17] : memref<32x1xf32, #tpu.memory_space<vmem>>, vector<32x1xf32>
    %21 = vector.broadcast %20 : vector<32x1xf32> to vector<32x256xf32>
    %22 = arith.addf %19, %21 : vector<32x256xf32>
    %23 = vector.broadcast %17 : vector<32x1xf32> to vector<32x256xf32>
    %24 = arith.addf %22, %23 : vector<32x256xf32>
    %cst_18 = arith.constant 0.000000e+00 : f32
    %25 = vector.broadcast %cst_18 : f32 to vector<32x256xf32>
    %26 = arith.maximumf %24, %25 : vector<32x256xf32>
    %c0_19 = arith.constant 0 : index
    %27 = memref.load %arg2[%c0_19] : memref<3xf32, #tpu.memory_space<smem>>
    %c0_20 = arith.constant 0 : index
    %c0_21 = arith.constant 0 : index
    %c0_22 = arith.constant 0 : index
    %28 = vector.load %arg10[%c0_20, %c0_21, %c0_22] : memref<3x32x32xf32, #tpu.memory_space<vmem>>, vector<1x32x32xf32>
    %29 = vector.shape_cast %28 : vector<1x32x32xf32> to vector<32x32xf32>
    %30 = vector.broadcast %27 : f32 to vector<32x32xf32>
    %31 = arith.mulf %30, %29 : vector<32x32xf32>
    %c0_23 = arith.constant 0 : index
    %32 = memref.load %arg2[%c0_23] : memref<3xf32, #tpu.memory_space<smem>>
    %c0_24 = arith.constant 0 : index
    %c0_25 = arith.constant 0 : index
    %c0_26 = arith.constant 0 : index
    %33 = vector.load %arg11[%c0_24, %c0_25, %c0_26] : memref<3x32x1xf32, #tpu.memory_space<vmem>>, vector<1x32x1xf32>
    %34 = vector.shape_cast %33 : vector<1x32x1xf32> to vector<32x1xf32>
    %35 = vector.broadcast %32 : f32 to vector<32x1xf32>
    %36 = arith.mulf %35, %34 : vector<32x1xf32>
    %c1 = arith.constant 1 : index
    %37 = memref.load %arg2[%c1] : memref<3xf32, #tpu.memory_space<smem>>
    %c1_27 = arith.constant 1 : index
    %c0_28 = arith.constant 0 : index
    %c0_29 = arith.constant 0 : index
    %38 = vector.load %arg10[%c1_27, %c0_28, %c0_29] : memref<3x32x32xf32, #tpu.memory_space<vmem>>, vector<1x32x32xf32>
    %39 = vector.shape_cast %38 : vector<1x32x32xf32> to vector<32x32xf32>
    %40 = vector.broadcast %37 : f32 to vector<32x32xf32>
    %41 = arith.mulf %40, %39 : vector<32x32xf32>
    %42 = arith.addf %31, %41 : vector<32x32xf32>
    %c1_30 = arith.constant 1 : index
    %43 = memref.load %arg2[%c1_30] : memref<3xf32, #tpu.memory_space<smem>>
    %c1_31 = arith.constant 1 : index
    %c0_32 = arith.constant 0 : index
    %c0_33 = arith.constant 0 : index
    %44 = vector.load %arg11[%c1_31, %c0_32, %c0_33] : memref<3x32x1xf32, #tpu.memory_space<vmem>>, vector<1x32x1xf32>
    %45 = vector.shape_cast %44 : vector<1x32x1xf32> to vector<32x1xf32>
    %46 = vector.broadcast %43 : f32 to vector<32x1xf32>
    %47 = arith.mulf %46, %45 : vector<32x1xf32>
    %48 = arith.addf %36, %47 : vector<32x1xf32>
    %c2 = arith.constant 2 : index
    %49 = memref.load %arg2[%c2] : memref<3xf32, #tpu.memory_space<smem>>
    %c2_34 = arith.constant 2 : index
    %c0_35 = arith.constant 0 : index
    %c0_36 = arith.constant 0 : index
    %50 = vector.load %arg10[%c2_34, %c0_35, %c0_36] : memref<3x32x32xf32, #tpu.memory_space<vmem>>, vector<1x32x32xf32>
    %51 = vector.shape_cast %50 : vector<1x32x32xf32> to vector<32x32xf32>
    %52 = vector.broadcast %49 : f32 to vector<32x32xf32>
    %53 = arith.mulf %52, %51 : vector<32x32xf32>
    %54 = arith.addf %42, %53 : vector<32x32xf32>
    %c2_37 = arith.constant 2 : index
    %55 = memref.load %arg2[%c2_37] : memref<3xf32, #tpu.memory_space<smem>>
    %c2_38 = arith.constant 2 : index
    %c0_39 = arith.constant 0 : index
    %c0_40 = arith.constant 0 : index
    %56 = vector.load %arg11[%c2_38, %c0_39, %c0_40] : memref<3x32x1xf32, #tpu.memory_space<vmem>>, vector<1x32x1xf32>
    %57 = vector.shape_cast %56 : vector<1x32x1xf32> to vector<32x1xf32>
    %58 = vector.broadcast %55 : f32 to vector<32x1xf32>
    %59 = arith.mulf %58, %57 : vector<32x1xf32>
    %60 = arith.addf %48, %59 : vector<32x1xf32>
    %cst_41 = arith.constant dense<0.000000e+00> : vector<32x256xf32>
    %61 = tpu.matmul %54, %26, %cst_41 {dimension_numbers = #tpu.dot_dimension_numbers<[1], [0], [0], [1], [0, 0, 1, 1], [], []>} : vector<32x32xf32>, vector<32x256xf32>, vector<32x256xf32> -> vector<32x256xf32>
    %62 = vector.broadcast %60 : vector<32x1xf32> to vector<32x256xf32>
    %63 = arith.addf %61, %62 : vector<32x256xf32>
    %c0_42 = arith.constant 0 : index
    %c0_43 = arith.constant 0 : index
    %64 = vector.load %arg14[%c0_42, %c0_43] : memref<32x1xf32, #tpu.memory_space<vmem>>, vector<32x1xf32>
    %65 = vector.broadcast %1 : f32 to vector<32x1xf32>
    %66 = arith.mulf %65, %64 : vector<32x1xf32>
    %c0_44 = arith.constant 0 : index
    %c0_45 = arith.constant 0 : index
    %67 = vector.load %arg16[%c0_44, %c0_45] : memref<32x1xf32, #tpu.memory_space<vmem>>, vector<32x1xf32>
    %68 = arith.addf %66, %67 : vector<32x1xf32>
    %c0_46 = arith.constant 0 : index
    %c0_47 = arith.constant 0 : index
    %69 = vector.load %arg15[%c0_46, %c0_47] : memref<32x32xf32, #tpu.memory_space<vmem>>, vector<32x32xf32>
    %cst_48 = arith.constant dense<0.000000e+00> : vector<32x1xf32>
    %70 = tpu.matmul %69, %9, %cst_48 {dimension_numbers = #tpu.dot_dimension_numbers<[1], [0], [0], [1], [0, 0, 1, 1], [], []>} : vector<32x32xf32>, vector<32x1xf32>, vector<32x1xf32> -> vector<32x1xf32>
    %71 = arith.addf %68, %70 : vector<32x1xf32>
    %c0_49 = arith.constant 0 : index
    %c0_50 = arith.constant 0 : index
    %72 = vector.load %arg12[%c0_49, %c0_50] : memref<32x8xf32, #tpu.memory_space<vmem>>, vector<32x8xf32>
    %cst_51 = arith.constant dense<0.000000e+00> : vector<32x256xf32>
    %73 = tpu.matmul %72, %3, %cst_51 {dimension_numbers = #tpu.dot_dimension_numbers<[1], [0], [0], [1], [0, 0, 1, 1], [], []>} : vector<32x8xf32>, vector<8x256xf32>, vector<32x256xf32> -> vector<32x256xf32>
    %c0_52 = arith.constant 0 : index
    %c0_53 = arith.constant 0 : index
    %74 = vector.load %arg13[%c0_52, %c0_53] : memref<32x1xf32, #tpu.memory_space<vmem>>, vector<32x1xf32>
    %75 = vector.broadcast %74 : vector<32x1xf32> to vector<32x256xf32>
    %76 = arith.addf %73, %75 : vector<32x256xf32>
    %77 = vector.broadcast %71 : vector<32x1xf32> to vector<32x256xf32>
    %78 = arith.addf %76, %77 : vector<32x256xf32>
    %79 = arith.addf %78, %63 : vector<32x256xf32>
    %cst_54 = arith.constant 0.000000e+00 : f32
    %80 = vector.broadcast %cst_54 : f32 to vector<32x256xf32>
    %81 = arith.maximumf %79, %80 : vector<32x256xf32>
    %c0_55 = arith.constant 0 : index
    %c0_56 = arith.constant 0 : index
    %82 = vector.load %arg17[%c0_55, %c0_56] : memref<4x32xf32, #tpu.memory_space<vmem>>, vector<4x32xf32>
    %cst_57 = arith.constant dense<0.000000e+00> : vector<4x256xf32>
    %83 = tpu.matmul %82, %81, %cst_57 {dimension_numbers = #tpu.dot_dimension_numbers<[1], [0], [0], [1], [0, 0, 1, 1], [], []>} : vector<4x32xf32>, vector<32x256xf32>, vector<4x256xf32> -> vector<4x256xf32>
    %c0_58 = arith.constant 0 : index
    %c0_59 = arith.constant 0 : index
    %84 = vector.load %arg18[%c0_58, %c0_59] : memref<4x1xf32, #tpu.memory_space<vmem>>, vector<4x1xf32>
    %85 = vector.broadcast %84 : vector<4x1xf32> to vector<4x256xf32>
    %86 = arith.addf %83, %85 : vector<4x256xf32>
    %c0_60 = arith.constant 0 : index
    %c0_61 = arith.constant 0 : index
    %c0_62 = arith.constant 0 : index
    %87 = vector.load %arg19[%c0_60, %c0_61, %c0_62] : memref<1x4x256xf32, #tpu.memory_space<vmem>>, vector<1x4x256xf32>
    %88 = vector.shape_cast %87 : vector<1x4x256xf32> to vector<4x256xf32>
    %89 = vector.shape_cast %86 : vector<4x256xf32> to vector<1x4x256xf32>
    tpu.vector_store %arg19[%c0_60, %c0_61, %c0_62], %89 {strides = array<i32>} : memref<1x4x256xf32, #tpu.memory_space<vmem>>, vector<1x4x256xf32>,
    return
  }
  func.func @transform_0(%arg0: i32) -> i32 {
    %c0_i32 = arith.constant 0 : i32
    %c0_i32_0 = arith.constant 0 : i32
    return %c0_i32 : i32
  }
  func.func @transform_1(%arg0: i32) -> i32 {
    %c0_i32 = arith.constant 0 : i32
    %c0_i32_0 = arith.constant 0 : i32
    return %c0_i32 : i32
  }
  func.func @transform_2(%arg0: i32) -> (i32, i32, i32) {
    %c0_i32 = arith.constant 0 : i32
    %c0_i32_0 = arith.constant 0 : i32
    %c0_i32_1 = arith.constant 0 : i32
    return %arg0, %c0_i32, %c0_i32_0 : i32, i32, i32
  }
  func.func @transform_3(%arg0: i32) -> (i32, i32, i32) {
    %c0_i32 = arith.constant 0 : i32
    %c0_i32_0 = arith.constant 0 : i32
    %c0_i32_1 = arith.constant 0 : i32
    return %arg0, %c0_i32, %c0_i32_0 : i32, i32, i32
  }
  func.func @transform_4(%arg0: i32) -> (i32, i32) {
    %c0_i32 = arith.constant 0 : i32
    %c0_i32_0 = arith.constant 0 : i32
    %c0_i32_1 = arith.constant 0 : i32
    return %c0_i32, %c0_i32_0 : i32, i32
  }
  func.func @transform_5(%arg0: i32) -> (i32, i32) {
    %c0_i32 = arith.constant 0 : i32
    %c0_i32_0 = arith.constant 0 : i32
    %c0_i32_1 = arith.constant 0 : i32
    return %c0_i32, %c0_i32_0 : i32, i32
  }
  func.func @transform_6(%arg0: i32) -> (i32, i32) {
    %c0_i32 = arith.constant 0 : i32
    %c0_i32_0 = arith.constant 0 : i32
    %c0_i32_1 = arith.constant 0 : i32
    return %c0_i32, %c0_i32_0 : i32, i32
  }
  func.func @transform_7(%arg0: i32) -> (i32, i32) {
    %c0_i32 = arith.constant 0 : i32
    %c0_i32_0 = arith.constant 0 : i32
    %c0_i32_1 = arith.constant 0 : i32
    return %c0_i32, %c0_i32_0 : i32, i32
  }
  func.func @transform_8(%arg0: i32) -> (i32, i32) {
    %c0_i32 = arith.constant 0 : i32
    %c0_i32_0 = arith.constant 0 : i32
    %c0_i32_1 = arith.constant 0 : i32
    return %c0_i32, %c0_i32_0 : i32, i32
  }
  func.func @transform_9(%arg0: i32) -> (i32, i32, i32) {
    %c0_i32 = arith.constant 0 : i32
    %c0_i32_0 = arith.constant 0 : i32
    %c0_i32_1 = arith.constant 0 : i32
    %c0_i32_2 = arith.constant 0 : i32
    return %c0_i32, %c0_i32_0, %c0_i32_1 : i32, i32, i32
  }
  func.func @transform_10(%arg0: i32) -> (i32, i32, i32) {
    %c0_i32 = arith.constant 0 : i32
    %c0_i32_0 = arith.constant 0 : i32
    %c0_i32_1 = arith.constant 0 : i32
    %c0_i32_2 = arith.constant 0 : i32
    return %c0_i32, %c0_i32_0, %c0_i32_1 : i32, i32, i32
  }
  func.func @transform_11(%arg0: i32) -> (i32, i32) {
    %c0_i32 = arith.constant 0 : i32
    %c0_i32_0 = arith.constant 0 : i32
    %c0_i32_1 = arith.constant 0 : i32
    return %c0_i32, %c0_i32_0 : i32, i32
  }
  func.func @transform_12(%arg0: i32) -> (i32, i32) {
    %c0_i32 = arith.constant 0 : i32
    %c0_i32_0 = arith.constant 0 : i32
    %c0_i32_1 = arith.constant 0 : i32
    return %c0_i32, %c0_i32_0 : i32, i32
  }
  func.func @transform_13(%arg0: i32) -> (i32, i32) {
    %c0_i32 = arith.constant 0 : i32
    %c0_i32_0 = arith.constant 0 : i32
    %c0_i32_1 = arith.constant 0 : i32
    return %c0_i32, %c0_i32_0 : i32, i32
  }
  func.func @transform_14(%arg0: i32) -> (i32, i32) {
    %c0_i32 = arith.constant 0 : i32
    %c0_i32_0 = arith.constant 0 : i32
    %c0_i32_1 = arith.constant 0 : i32
    return %c0_i32, %c0_i32_0 : i32, i32
  }
  func.func @transform_15(%arg0: i32) -> (i32, i32) {
    %c0_i32 = arith.constant 0 : i32
    %c0_i32_0 = arith.constant 0 : i32
    %c0_i32_1 = arith.constant 0 : i32
    return %c0_i32, %c0_i32_0 : i32, i32
  }
  func.func @transform_16(%arg0: i32) -> (i32, i32) {
    %c0_i32 = arith.constant 0 : i32
    %c0_i32_0 = arith.constant 0 : i32
    %c0_i32_1 = arith.constant 0 : i32
    return %c0_i32, %c0_i32_0 : i32, i32
  }
  func.func @transform_17(%arg0: i32) -> (i32, i32) {
    %c0_i32 = arith.constant 0 : i32
    %c0_i32_0 = arith.constant 0 : i32
    %c0_i32_1 = arith.constant 0 : i32
    return %c0_i32, %c0_i32_0 : i32, i32
  }
  func.func @transform_18(%arg0: i32) -> (i32, i32, i32) {
    %c0_i32 = arith.constant 0 : i32
    %c0_i32_0 = arith.constant 0 : i32
    %c0_i32_1 = arith.constant 0 : i32
    return %arg0, %c0_i32, %c0_i32_0 : i32, i32, i32
  }
}

</mosaic_0001>

<bundles_post_ra>
// kernel: tpu_custom_call.1
= control target key start
LH: loop header
LB: loop body
LE: loop exit
PB: predicated region body
PF: predicated region fallthrough
CT: control target
= control target key end

     0   :  { %s2511_s0 = inlined_call_operand.vmem [shape: f32[2], index: 0, kind: input, shape index: {}]   ;;  %s2512_s1 = inlined_call_operand.vmem [shape: f32[3], index: 1, kind: input, shape index: {}]   ;;  %s2513_s2 = inlined_call_operand.vmem [shape: f32[2,8,256], index: 2, kind: input, shape index: {}]   ;;  %s2514_s3 = inlined_call_operand.vmem [shape: f32[2,32,8], index: 3, kind: input, shape index: {}]   ;;  %s2515_s4 = inlined_call_operand.vmem [shape: f32[32,8], index: 4, kind: input, shape index: {}]   ;;  %s2516_s5 = inlined_call_operand.vmem [shape: f32[32,1], index: 5, kind: input, shape index: {}]   ;;  %s2517_s6 = inlined_call_operand.vmem [shape: f32[32,1], index: 6, kind: input, shape index: {}]   ;;  %s2518_s7 = inlined_call_operand.vmem [shape: f32[32,32], index: 7, kind: input, shape index: {}]   ;;  %s2519_s8 = inlined_call_operand.vmem [shape: f32[32,1], index: 8, kind: input, shape index: {}]   ;;  %s2520_s9 = inlined_call_operand.vmem [shape: f32[3,32,32], index: 9, kind: input, shape index: {}]   ;;  %s2521_s10 = inlined_call_operand.vmem [shape: f32[3,32,1], index: 10, kind: input, shape index: {}]   ;;  %s2522_s11 = inlined_call_operand.vmem [shape: f32[32,8], index: 11, kind: input, shape index: {}]   ;;  %s2523_s12 = inlined_call_operand.vmem [shape: f32[32,1], index: 12, kind: input, shape index: {}]   ;;  %s2524_s13 = inlined_call_operand.vmem [shape: f32[32,1], index: 13, kind: input, shape index: {}]   ;;  %s2525_s14 = inlined_call_operand.vmem [shape: f32[32,32], index: 14, kind: input, shape index: {}]   ;;  %s2526_s15 = inlined_call_operand.vmem [shape: f32[32,1], index: 15, kind: input, shape index: {}]   ;;  %s2527_s16 = inlined_call_operand.vmem [shape: f32[4,32], index: 16, kind: input, shape index: {}]   ;;  %s2528_s17 = inlined_call_operand.vmem [shape: f32[4,1], index: 17, kind: input, shape index: {}]   ;;  %s2529_s18 = inlined_call_operand.hbm [shape: f32[2,4,256], index: 18, kind: output, shape index: {}]  }
   0x1   :  { %2538 = sst [smem:[#allocation16_spill]] %s2511_s0 }
   0x2   :  { %2539 = sst [smem:[#allocation17_spill]] %s2512_s1 }
   0x3   :  { %2540 = sst [smem:[#allocation18_spill]] %s2513_s2 }
   0x4   :  { %2541 = sst [smem:[#allocation19_spill]] %s2514_s3 }
   0x5   :  { %23 = vsyncpa [#allocation4], 0 }
   0x6   :  { %24 = vsyncpa [#allocation6], 0 }
   0x7   :  { %25 = vsyncpa [#allocation3], 0 }
   0x8   :  { %27 = vsyncpa [#allocation3 + $0x1], 0  ;;  %s2055_s27 = smov 0   ;;  %s2057_s28 = smov 0  }
   0x9   :  { %s2059_s29 = smov 0   ;;  %s2061_s30 = smov 0  }
   0xa LB: > { %2542 = sst [smem:[#allocation11_spill]] %s1941_s27  ;;  %s2076_s0 = sadd.s32 4294967295, %s1953_s30   ;;  %s1953_s30 = sphi %s2061_s30, %s2564_s30   ;;  %s1949_s29 = sphi %s2059_s29, %s2566_s29   ;;  %s1945_s28 = sphi %s2057_s28, %s2568_s28   ;;  %s1941_s27 = sphi %s2055_s27, %s2567_s27  }
   0xb   : > { %2543 = sst [smem:[#allocation12_spill]] %s1949_s29  ;;  %s1617_s19 = sadd.s32 4294967294, %s1953_s30  }
   0xc   : > { %s2080_s1 = sadd.s32 1, %s1953_s30   ;;  %s428_s20 = sadd.s32 1, %s1949_s29 }
   0xd   : > { %2544 = sst [smem:[#allocation13_spill]] %s2080_s1  ;;  %s425_s21 = ssub.s32 %s1953_s30, %s2080_s1 }
   0xe   : > { %p438_p0 = scmp.ne.s32.totalorder %s1949_s29, %s1945_s28  ;;  %p426_p1 = scmp.eq.s32.totalorder %s425_s21, 0 }
   0xf   : > { %p439_p2 = scmp.eq.s32.totalorder %s2076_s0, 1  ;;  %p444_p3 = scmp.ne.s32.totalorder %s1945_s28, %s1941_s27 }
  0x10   : > { %p445_p4 = scmp.eq.s32.totalorder %s1617_s19, 1  ;;  %p1618_p7 = scmp.ge.s32.totalorder %s1953_s30, 1 }
  0x11   : > { %s2091_s22 = scalar_select %p426_p1, %s1949_s29, %s428_s20  }
  0x12   : > { %p2093_p5 = por %p439_p2, %p438_p0  ;;  %p2097_p6 = por %p445_p4, %p444_p3 }
  0x13   : > { %2545 = sst [smem:[#allocation14_spill]] %s2091_s22  ;;  %p452_p8 = scmp.lt.s32.totalorder %s1953_s30, 3 }
  0x14   : > { %s2546_s2 = scalar_select %p2093_p5, 1, 0 }
  0x15   : > { %s2547_s23 = scalar_select %p2097_p6, 1, 0 }
  0x16   : > { %p2535_p9 = scmp.eq.s32.totalorder %s2076_s0, 0  ;;  %p2104_p10 = pnand %p1618_p7, %p452_p8 }
  0x17   : > { %2548 = sst [smem:[#allocation15_spill]] %s2547_s23  ;;  %s2551_s29 = sld [smem:[#allocation17_spill]] }
  0x18   : > { %s2549_s24 = scalar_select %p2104_p10, 1, 0 }
  0x19   : > { %s2550_s19 = sld [smem:[#allocation16_spill]]  ;;  %p1799_p11 = pneg %p2104_p10 }
  0x1b   : > { %p2118_p12 = pnand %p2535_p9, %p1799_p11 }
  0x1d   : > { %s476_s1 = sshll.u32 %s2551_s29, 4  ;;  %p1855_p0 = pneg %p2118_p12  ;;  %s477_s1 = int_to_ptr.vmem [resolvable:$true] %s476_s1 }
  0x1f   : > { %s465_s20 = sshll.u32 %s2550_s19, 4  ;;  %s466_s20 = int_to_ptr.vmem [resolvable:$true] %s465_s20 }
  0x20   : > { %s1853_s27 = scalar_lea.vmem %s466_s20, 16  ;;  %p1861_p3 = scmp.lt.s32.totalorder %s466_s20, %s466_s20 }
  0x21   : > { %p1854_p13 = scmp.ne.s32.totalorder %s466_s20, %s1853_s27  ;;  %p1862_p4 = scmp.lt.s32.totalorder %s1853_s27, %s1853_s27 }
  0x23   : > { %p1856_p1 = pnand %p1855_p0, %p1854_p13  ;;  %p1863_p7 = por %p1862_p4, %p1861_p3 }
  0x25   : > { %p1857_p2 = pneg %p1856_p1 }
  0x27   : > { %p1864_p8 = pnand %p1863_p7, %p1857_p2 }
  0x29   : > { %1867 = shalt.err (!%p1864_p8)
}
  0x2a   : > { %s1955_s29 = smov [#allocation2]   ;;  %s1868_s22 = scalar_lea.vmem %s477_s1, 16 }
  0x2b   : > { %1802 = dma.vmem_to_smem (!%p2118_p12), %s466_s20, 16, %s1955_s29, [#allocation4]  }
  0x2c   : > { %p1869_p11 = scmp.ne.s32.totalorder %s477_s1, %s1868_s22  ;;  %p1876_p5 = scmp.lt.s32.totalorder %s477_s1, %s477_s1 }
  0x2d   : > { %p1877_p10 = scmp.lt.s32.totalorder %s1868_s22, %s1868_s22 }
  0x2e   : > { %p1871_p9 = pnand %p1869_p11, %p1855_p0 }
  0x2f   : > { %p1878_p13 = por %p1877_p10, %p1876_p5 }
  0x30   : > { %p1872_p6 = pneg %p1871_p9 }
  0x32   : > { %p1879_p1 = pnand %p1878_p13, %p1872_p6 }
  0x34   : > { %1882 = shalt.err (!%p1879_p1)
}
  0x35   : > { %s1956_s25 = smov [#allocation5]   ;;  %p2553_p2 = scmp.ne.s32.totalorder %s2549_s24, 0 }
  0x36   : > { %1805 = dma.vmem_to_smem (!%p2118_p12), %s477_s1, 16, %s1956_s25, [#allocation6]  }
  0x37   : > { %547 = sbr.rel (%p2553_p2) target bundleno = 1196 (0x4ac), region = 92  ;;  %p2554_p3 = scmp.eq.s32.totalorder (!%p2553_p2), %s2076_s0, 0 }
  0x3e   : > { %1928 = dma.done.wait (%p2554_p3), [#allocation4], 16   ;;  %p2555_p4 = pmov %p2554_p3 }
  0x3f   : > { %p2556_p9 = pmov %p2554_p3 }
  0x40   : > { %1930 = vsyncadd (%p2555_p4), [#allocation4], 4294967280 }
  0x41   : > { %1932 = dma.done.wait (%p2556_p9), [#allocation6], 16   ;;  %p2557_p5 = pmov %p2554_p3 }
  0x43   : > { %1934 = vsyncadd (%p2557_p5), [#allocation6], 4294967280 }
  0x44   : > { %557 = sfence }
  0x45   : > { %p611_p6 = scmp.lt.s32.totalorder %s2076_s0, 1  ;;  %vm628_vm0 = vcmask 64512   ;;  %s2558_s3 = sld [smem:[#allocation19_spill]]  ;;  %v663_v8 = vld [vmem:[%s2518_s7] sm:$0xff]  ;;  %vm667_vm1 = vcmask 261120   ;;  %v1957_v9 = vmov 0.0  }
  0x46   : > { %1701 = vmatprep.mubr.msk.f32.mxu0 %vm667_vm1, %v663_v8  ;;  %s2559_s25 = sld [smem:[#allocation18_spill]]  ;;  %873 = vmatprep.mubr.f32.mxu1 %v1957_v9  ;;  %v769_v10 = vld [vmem:[%s2515_s4] sm:$0xff]  ;;  %v1958_v11 = vmov 0   ;;  %v774_v12 = vld [vmem:[%s2516_s5 + $0x8] sm:$0xff]  ;;  %s934_s20 = sld [smem:[#allocation5]]  ;;  %v775_v16 = vld [vmem:[%s2516_s5 + $0x10] sm:$0xff] }
  0x47   : > { %s612_s27 = scalar_select %p611_p6, %s2076_s0, 1  ;;  %1852 = vset.pattern.permute.xlu1 %v1958_v11  ;;  %1851 = vset.pattern.permute.xlu0 %v1958_v11  ;;  %v773_v15 = vld [vmem:[%s2516_s5] sm:$0xff]  ;;  %v945_v17 = vld [vmem:[%s2521_s10 + $0x8] sm:$0xff]  ;;  %v776_v20 = vld [vmem:[%s2516_s5 + $0x18] sm:$0xff] }
  0x48   : > { %s1638_s29 = sld [smem:[#allocation5 + $0x1]]  ;;  %s1647_s23 = sld [smem:[#allocation5 + $0x2]]  ;;  %v770_v18 = vld [vmem:[%s2515_s4 + $0x8] sm:$0xff]  ;;  %v771_v27 = vld [vmem:[%s2515_s4 + $0x10] sm:$0xff]  ;;  %v772_v31 = vld [vmem:[%s2515_s4 + $0x18] sm:$0xff] }
  0x49   : > { %s1675_s1 = sshll.u32 %s612_s27, 5  ;;  %s1674_s21 = sshll.u32 %s612_s27, 4  ;;  %v1644_v19 = vld [vmem:[%s2521_s10 + $0x28] sm:$0xff]  ;;  %v665_v44 = vld [vmem:[%s2518_s7 + $0x10] sm:$0xff]  ;;  %v666_v45 = vld [vmem:[%s2518_s7 + $0x18] sm:$0xff] }
  0x4a   : > { %v1653_v22 = vld [vmem:[%s2521_s10 + $0x48] sm:$0xff]  ;;  %v947_v46 = vld [vmem:[%s2521_s10 + $0x18] sm:$0xff]  ;;  %v657_v11 = vld [vmem:[%s2519_s8 + $0x10] sm:$0xff]  ;;  %s1676_s27 = sshll.u32 %s2076_s0, 7  ;;  %p2560_p12 = scmp.ne.s32.totalorder %s2546_s2, 0 }
  0x4b   : > { %s620_s26 = scalar_lea.vmem %s2558_s3, %s1675_s1  ;;  %v1255_v32 = vld [vmem:[%s2523_s12 + $0x8] sm:$0xff]  ;;  %v1646_v47 = vld [vmem:[%s2521_s10 + $0x38] sm:$0xff]  ;;  %s2469_s24 = scalar_lea.hbm %s2529_s18, %s1676_s27 }
  0x4c   : > { %v626_v0 = vld [vmem:[%s620_s26 + $0x10] sm:$0xff]  ;;  %v624_v1 = vld [vmem:[%s620_s26] sm:$0xff]  ;;  %v627_v2 = vld [vmem:[%s620_s26 + $0x18] sm:$0xff]  ;;  %s615_s1 = scalar_lea.vmem %s2559_s25, %s1674_s21  ;;  %v2187_v21 = vstv %s934_s20  ;;  %s621_s21 = sld [smem:[#allocation2 + %s2076_s0]] }
  0x4d   : > { %v635_v3 = vsel %vm628_vm0, %v626_v0, 0.0  ;;  %v629_v4 = vsel %vm628_vm0, %v624_v1, 0.0  ;;  %v625_v5 = vld [vmem:[%s620_s26 + $0x8] sm:$0xff]  ;;  %v638_v6 = vsel %vm628_vm0, %v627_v2, 0.0  ;;  %v2163_v14 = vld [vmem:[%s615_s1] sm:$0xff]  ;;  %v949_v23 = vmul.f32 %v945_v17, %v2187_v21  ;;  %v1655_v50 = vld [vmem:[%s2521_s10 + $0x58] sm:$0xff] }
  0x4e   : > { %636 = vadd.xlane.f32.xlu1 %v635_v3  ;;  %630 = vadd.xlane.f32.xlu0 %v629_v4  ;;  %v632_v7 = vsel %vm628_vm0, %v625_v5, 0.0  ;;  %v2161_v13 = vld [vmem:[%s615_s1 + $0x8] sm:$0xff]  ;;  %v2193_v24 = vstv %s1638_s29  ;;  %v2197_v26 = vstv %s1647_s23  ;;  %v951_v48 = vmul.f32 %v947_v46, %v2187_v21  ;;  %v1257_v54 = vld [vmem:[%s2523_s12 + $0x18] sm:$0xff]  ;;  %s608_s23 = sand.u32 1, %s1945_s28   ;;  %s1959_s0 = smov [#allocation7]  }
  0x4f   : > { %809 = vmatprep.subr.mxu1 %v2161_v13  ;;  %v973_v25 = vmul.f32 %v1644_v19, %v2193_v24  ;;  %v1001_v28 = vmul.f32 %v1653_v22, %v2197_v26  ;;  %v664_v43 = vld [vmem:[%s2518_s7 + $0x8] sm:$0xff]  ;;  %v975_v49 = vmul.f32 %v1646_v47, %v2193_v24  ;;  %v1003_v52 = vmul.f32 %v1655_v50, %v2197_v26  ;;  %v646_v3 = vld [vmem:[%s2517_s6] sm:$0xff]  ;;  %v648_v4 = vld [vmem:[%s2517_s6 + $0x10] sm:$0xff]  ;;  %s1625_s19 = sshll.u32 %s608_s23, 3  ;;  %s1510_s26 = scalar_lea.sflag [#allocation3], %s608_s23 }
  0x50   : > { %810 = vmatpush1.msra.mxu1 %v2163_v14  ;;  %v647_v63 = vld [vmem:[%s2517_s6 + $0x8] sm:$0xff]  ;;  %v649_v17 = vld [vmem:[%s2517_s6 + $0x18] sm:$0xff]  ;;  %v1643_v22 = vld [vmem:[%s2521_s10 + $0x20] sm:$0xff]  ;;  %s1887_s20 = sshll.u32 %s1959_s0, 4  ;;  %s1888_s20 = int_to_ptr.vmem [resolvable:$false] %s1887_s20 }
  0x51   : > { %1634 = vmatmul.mubr.msk.f32.vlgmr.msra.gmra.mrb[0].mxu1 %vm628_vm0, %v769_v10  ;;  %v977_v29 = vadd.f32 %v973_v25, %v949_v23  ;;  %v979_v51 = vadd.f32 %v975_v49, %v951_v48  ;;  %v656_v2 = vld [vmem:[%s2519_s8 + $0x8] sm:$0xff]  ;;  %v1254_v47 = vld [vmem:[%s2523_s12] sm:$0xff]  ;;  %v1256_v49 = vld [vmem:[%s2523_s12 + $0x10] sm:$0xff]  ;;  %s1889_s29 = scalar_lea.vmem %s1888_s20, 256 }
  0x52   : > { %639 = vadd.xlane.f32.xlu1 %v638_v6  ;;  %633 = vadd.xlane.f32.xlu0 %v632_v7  ;;  %v2266_v0 = vstv %s621_s21  ;;  %v655_v7 = vld [vmem:[%s2519_s8] sm:$0xff]  ;;  %s610_s21 = scalar_lea.vmem [#allocation7], %s1625_s19 }
  0x53   : > { %879 = vmatprep.mubr.f32.mxu1 %v1957_v9  ;;  %v1005_v30 = vadd.f32 %v1001_v28, %v977_v29  ;;  %v1007_v53 = vadd.f32 %v1003_v52, %v979_v51  ;;  %v652_v1 = vmul.f32 %v2266_v0, %v647_v63  ;;  %v651_v6 = vmul.f32 %v2266_v0, %v646_v3  ;;  %v658_v28 = vld [vmem:[%s2519_s8 + $0x18] sm:$0xff]  ;;  %s1524_s22 = sshll.u32 %s610_s21, 4  ;;  %s2471_s22 = int_to_ptr.vmem [resolvable:$true] %s1524_s22 }
  0x54   : > { %v653_v8 = vmul.f32 %v2266_v0, %v648_v4  ;;  %v654_v25 = vmul.f32 %v2266_v0, %v649_v17  ;;  %s1883_s3 = scalar_lea.vmem %s2471_s22, 128  ;;  %p1890_p8 = scmp.lt.s32.totalorder %s2471_s22, %s1888_s20 }
  0x55   : > { %1635 = vmatmul.mubr.msk.f32.gmra.mrb[2].mxu1 %vm628_vm0, %v770_v18  ;;  %v660_v5 = vadd.f32 %v656_v2, %v652_v1  ;;  %p1884_p10 = scmp.ne.s32.totalorder %s2471_s22, %s1883_s3  ;;  %p1891_p11 = scmp.lt.s32.totalorder %s1889_s29, %s1883_s3 }
  0x56   : > { %885 = vmatprep.mubr.f32.mxu1 %v1957_v9  ;;  %v661_v18 = vadd.f32 %v657_v11, %v653_v8  ;;  %v1639_v11 = vld [vmem:[%s2520_s9 + $0x20] sm:$0xff] }
  0x57   : > { %p1885_p0 = pnand %p1884_p10, %p2560_p12  ;;  %p1892_p13 = por %p1891_p11, %p1890_p8 }
  0x59   : > { %1636 = vmatmul.mubr.msk.f32.gmra.mrb[4].mxu1 %vm628_vm0, %v771_v27  ;;  %p1886_p7 = pneg %p1885_p0 }
  0x5a   : > { %891 = vmatprep.mubr.f32.mxu1 %v1957_v9 }
  0x5b   : > { %p1893_p1 = pnand %p1892_p13, %p1886_p7 }
  0x5d   : > { %1637 = vmatmul.mubr.msk.f32.gmra.mrb[6].mxu1 %vm628_vm0, %v772_v31  ;;  %v972_v31 = vmul.f32 %v1643_v22, %v2193_v24 }
  0x5e   : > { %1116 = vmatprep.mubr.f32.mxu1 %v1957_v9 }
  0x63   : > { %784 = vperm.xlu1 %1852, %v774_v12  }
  0x67   : > { %789 = vperm.xlu1 %1852, %v775_v16  }
  0x68   : > { %779 = vperm.xlu0 %1851, %v773_v15   ;;  %v659_v15 = vadd.f32 %v655_v7, %v651_v6 }
  0x6b   : > { %794 = vperm.xlu1 %1852, %v776_v20   ;;  %v944_v20 = vld [vmem:[%s2521_s10] sm:$0xff] }
  0x6c   : > { %1015 = vperm.xlu0 %1851, %v1005_v30   ;;  %v948_v30 = vmul.f32 %v944_v20, %v2187_v21  ;;  %v959_v20 = vmul.f32 %v1639_v11, %v2193_v24  ;;  %v1130_v11 = vld [vmem:[%s2524_s13 + $0x8] sm:$0xff] }
  0x70   : > { %1265 = vperm.xlu0 %1851, %v1255_v32   ;;  %v1652_v32 = vld [vmem:[%s2521_s10 + $0x40] sm:$0xff] }
  0x74   : > { %1025 = vperm.xlu0 %1851, %v1007_v53  }
  0x78   : > { %1275 = vperm.xlu0 %1851, %v1257_v54  }
  0xdb   : > { %v637_v33 = vpop.xlane.xlu1 %636  ;;  %v631_v34 = vpop.xlane.xlu0 %630 }
  0xdc   : > { %v644_v37 = vmul.f32 0.125, %v637_v33  ;;  %v642_v38 = vmul.f32 0.125, %v631_v34  ;;  %v662_v33 = vadd.f32 %v658_v28, %v654_v25  ;;  %v976_v34 = vadd.f32 %v972_v31, %v948_v30  ;;  %v1648_v25 = vld [vmem:[%s2520_s9 + $0x40] sm:$0xff] }
  0xdf   : > { %v640_v35 = vpop.xlane.xlu1 %639  ;;  %v634_v36 = vpop.xlane.xlu0 %633 }
  0xe0   : > { %v645_v39 = vmul.f32 0.125, %v640_v35  ;;  %v643_v40 = vmul.f32 0.125, %v634_v36  ;;  %v1000_v35 = vmul.f32 %v1652_v32, %v2197_v26  ;;  %v946_v36 = vld [vmem:[%s2521_s10 + $0x10] sm:$0xff] }
  0xe2   : > { %v2214_v41 = vpack.c.bf16 %v643_v40, %v642_v38  ;;  %v2216_v42 = vpack.c.bf16 %v645_v39, %v644_v37  ;;  %v1645_v37 = vld [vmem:[%s2521_s10 + $0x30] sm:$0xff]  ;;  %v1004_v39 = vadd.f32 %v1000_v35, %v976_v34  ;;  %v950_v40 = vmul.f32 %v946_v36, %v2187_v21  ;;  %v1642_v34 = vld [vmem:[%s2520_s9 + $0x38] sm:$0xff] }
  0xe3   : > { %v785_v50 = vpop.permute.xlu1 %784  ;;  %v987_v36 = vmul.f32 %v1648_v25, %v2197_v26 }
  0xe4   : > { %1722 = vmatprep.subr.bf16.mxu0 %v2214_v41 }
  0xe5   : > { %1724 = vmatpush3.bf16.msra.mxu0 %v2214_v41 }
  0xe6   : > { %1726 = vmatprep.subr.bf16.mxu0 %v2216_v42 }
  0xe7   : > { %v790_v51 = vpop.permute.xlu1 %789  ;;  %v780_v1 = vpop.permute.xlu0 %779 }
  0xe9   : > { %1728 = vmatpush3.bf16.msra.mxu0 %v2216_v42 }
  0xeb   : > { %v795_v52 = vpop.permute.xlu1 %794 }
  0xec   : > { %1702 = vmatmul.mubr.msk.f32.vlgmr.msra.gmra.mrb[0].mxu0 %vm667_vm1, %v664_v43  ;;  %v974_v43 = vmul.f32 %v1645_v37, %v2193_v24 }
  0xed   : > { %1704 = vmatprep.mubr.msk.f32.mxu0 %vm667_vm1, %v665_v44  ;;  %v1654_v44 = vld [vmem:[%s2521_s10 + $0x50] sm:$0xff] }
  0xee   : > { %v1002_v46 = vmul.f32 %v1654_v44, %v2197_v26 }
  0xf0   : > { %1705 = vmatmul.mubr.msk.f32.gmra.mrb[2].mxu0 %vm667_vm1, %v666_v45  ;;  %v978_v45 = vadd.f32 %v974_v43, %v950_v40 }
  0xf1   : > { %1104 = vmatprep.mubr.f32.mxu0 %v1957_v9 }
  0xf2   : > { %v1006_v48 = vadd.f32 %v1002_v46, %v978_v45  ;;  %v962_v46 = vmul.f32 %v1642_v34, %v2193_v24 }
 0x124   : > { %v2250_v55 = vpop.f32.mrb[0].mxu1 }
 0x125   : > { %v2252_v56 = vpop.f32.mrb[1].mxu1  ;;  %v876_v2 = vadd.f32 %v2250_v55, %v780_v1  ;;  %v1641_v55 = vld [vmem:[%s2520_s9 + $0x30] sm:$0xff] }
 0x126   : > { %v878_v3 = vadd.f32 %v2252_v56, %v780_v1  ;;  %v961_v28 = vmul.f32 %v1641_v55, %v2193_v24  ;;  %v1129_v55 = vld [vmem:[%s2524_s13] sm:$0xff] }
 0x128   : > { %v881_v57 = vpop.f32.mrb[2].mxu1 }
 0x129   : > { %v883_v58 = vpop.f32.mrb[3].mxu1  ;;  %v882_v54 = vadd.f32 %v881_v57, %v785_v50  ;;  %v937_v57 = vld [vmem:[%s2520_s9 + $0x10] sm:$0xff] }
 0x12a   : > { %v884_v63 = vadd.f32 %v883_v58, %v785_v50 }
 0x12c   : > { %v2254_v59 = vpop.f32.mrb[4].mxu1 }
 0x12d   : > { %v2256_v60 = vpop.f32.mrb[5].mxu1 }
 0x12e   : > { %v890_v17 = vadd.f32 %v2256_v60, %v790_v51  ;;  %v936_v60 = vld [vmem:[%s2520_s9 + $0x8] sm:$0xff] }
 0x12f   : > { %v941_v43 = vmul.f32 %v2187_v21, %v936_v60 }
 0x130   : > { %v2258_v61 = vpop.f32.mrb[6].mxu1 }
 0x131   : > { %v2260_v62 = vpop.f32.mrb[7].mxu1 }
 0x132   : > { %v896_v30 = vadd.f32 %v2260_v62, %v795_v52 }
 0x1bf   : > { %v1703_v10 = vpop.f32.mrb[0].mxu0 }
 0x1c0   : > { %v766_v12 = vadd.f32 %v1703_v10, %v660_v5  ;;  %v746_v16 = vpop.f32.mrb[1].mxu0  ;;  %v935_v10 = vld [vmem:[%s2520_s9] sm:$0xff] }
 0x1c1   : > { %v765_v23 = vadd.f32 %v746_v16, %v659_v15  ;;  %v888_v16 = vadd.f32 %v2254_v59, %v790_v51  ;;  %v1650_v59 = vld [vmem:[%s2520_s9 + $0x50] sm:$0xff]  ;;  %v1649_v51 = vld [vmem:[%s2520_s9 + $0x48] sm:$0xff] }
 0x1c2   : > { %905 = vperm.xlu1 %1852, %v766_v12   ;;  %v989_v40 = vmul.f32 %v1650_v59, %v2197_v26 }
 0x1c3   : > { %v1706_v19 = vpop.f32.mrb[2].mxu0 }
 0x1c4   : > { %v756_v27 = vpop.f32.mrb[3].mxu0  ;;  %v768_v38 = vadd.f32 %v1706_v19, %v662_v33  ;;  %v940_v19 = vmul.f32 %v2187_v21, %v935_v10  ;;  %v1640_v33 = vld [vmem:[%s2520_s9 + $0x28] sm:$0xff] }
 0x1c5   : > { %v767_v29 = vadd.f32 %v756_v27, %v661_v18  ;;  %v942_v27 = vmul.f32 %v2187_v21, %v937_v57  ;;  %v960_v44 = vmul.f32 %v1640_v33, %v2193_v24  ;;  %v1016_v57 = vpop.permute.xlu0 %1015 }
 0x1c6   : > { %900 = vperm.xlu1 %1852, %v765_v23   ;;  %v963_v62 = vadd.f32 %v959_v20, %v940_v19  ;;  %v1131_v19 = vld [vmem:[%s2524_s13 + $0x10] sm:$0xff] }
 0x1c7   : > { %v1135_v59 = vmul.f32 %v1131_v19, %v2266_v0 }
 0x1ca   : > { %910 = vperm.xlu1 %1852, %v767_v29   ;;  %v894_v29 = vadd.f32 %v2258_v61, %v795_v52  ;;  %v938_v61 = vld [vmem:[%s2520_s9 + $0x18] sm:$0xff] }
 0x1cb   : > { %v943_v45 = vmul.f32 %v2187_v21, %v938_v61  ;;  %v1651_v52 = vld [vmem:[%s2520_s9 + $0x58] sm:$0xff]  ;;  %v988_v21 = vmul.f32 %v1649_v51, %v2197_v26 }
 0x1cd   : > { %v966_v24 = vadd.f32 %v962_v46, %v943_v45 }
 0x1ce   : > { %915 = vperm.xlu1 %1852, %v768_v38  }
 0x1d2   : > { %1010 = vperm.xlu1 %1852, %v1004_v39   ;;  %v965_v39 = vadd.f32 %v961_v28, %v942_v27 }
 0x1d4   : > { %v993_v1 = vadd.f32 %v989_v40, %v965_v39 }
 0x1d6   : > { %1260 = vperm.xlu1 %1852, %v1254_v47  }
 0x1da   : > { %1020 = vperm.xlu1 %1852, %v1006_v48  }
 0x1de   : > { %1270 = vperm.xlu1 %1852, %v1256_v49  }
 0x241   : > { %v906_v53 = vpop.permute.xlu1 %905 }
 0x242   : > { %v920_v4 = vadd.f32 %v906_v53, %v882_v54  ;;  %v921_v5 = vadd.f32 %v906_v53, %v884_v63  ;;  %v991_v63 = vadd.f32 %v987_v36, %v963_v62 }
 0x244   : > { %v928_v56 = vmax.f32 %v920_v4, 0.0  ;;  %v929_v58 = vmax.f32 %v921_v5, 0.0 }
 0x245   : > { %v901_v6 = vpop.permute.xlu1 %900 }
 0x246   : > { %v918_v7 = vadd.f32 %v901_v6, %v876_v2  ;;  %v919_v8 = vadd.f32 %v901_v6, %v878_v3  ;;  %v964_v2 = vadd.f32 %v960_v44, %v941_v43  ;;  %v990_v3 = vmul.f32 %v1651_v52, %v2197_v26  ;;  %v1145_v26 = vld [vmem:[%s2525_s14] sm:$0xff]  ;;  %v1251_v6 = vld [vmem:[%s2522_s11 + $0x8] sm:$0xff] }
 0x248   : > { %v926_v12 = vmax.f32 %v918_v7, 0.0  ;;  %v927_v15 = vmax.f32 %v919_v8, 0.0  ;;  %v992_v4 = vadd.f32 %v988_v21, %v964_v2  ;;  %v994_v5 = vadd.f32 %v990_v3, %v966_v24  ;;  %v1252_v7 = vld [vmem:[%s2522_s11 + $0x10] sm:$0xff]  ;;  %v1253_v8 = vld [vmem:[%s2522_s11 + $0x18] sm:$0xff] }
 0x249   : > { %v911_v18 = vpop.permute.xlu1 %910 }
 0x24a   : > { %v1731_v22 = vpack.c.bf16 %v928_v56, %v926_v12  ;;  %v1729_v23 = vpack.c.bf16 %v929_v58, %v927_v15  ;;  %v922_v31 = vadd.f32 %v911_v18, %v888_v16  ;;  %v923_v32 = vadd.f32 %v911_v18, %v890_v17  ;;  %v1138_v15 = vld [vmem:[%s2526_s15 + $0x8] sm:$0xff]  ;;  %v1132_v17 = vld [vmem:[%s2524_s13 + $0x18] sm:$0xff]  ;;  %v1137_v18 = vld [vmem:[%s2526_s15] sm:$0xff] }
 0x24b   : > { %v1134_v12 = vmul.f32 %v1130_v11, %v2266_v0  ;;  %v1133_v16 = vmul.f32 %v1129_v55, %v2266_v0  ;;  %v1136_v27 = vmul.f32 %v1132_v17, %v2266_v0 }
 0x24c   : > { %1730 = vmatprep.subr.bf16.mxu0 %v1729_v23  ;;  %1753 = vmatprep.subr.bf16.mxu1 %v1729_v23  ;;  %v930_v47 = vmax.f32 %v922_v31, 0.0  ;;  %v931_v48 = vmax.f32 %v923_v32, 0.0 }
 0x24d   : > { %v916_v35 = vpop.permute.xlu1 %915  ;;  %1732 = vmatpush1.bf16.msra.mxu0 %v1731_v22  ;;  %1755 = vmatpush1.bf16.msra.mxu1 %v1731_v22  ;;  %v1266_v22 = vpop.permute.xlu0 %1265  ;;  %v1142_v25 = vadd.f32 %v1138_v15, %v1134_v12  ;;  %v1141_v28 = vadd.f32 %v1137_v18, %v1133_v16 }
 0x24e   : > { %v924_v37 = vadd.f32 %v916_v35, %v894_v29  ;;  %v925_v38 = vadd.f32 %v916_v35, %v896_v30  ;;  %v1140_v29 = vld [vmem:[%s2526_s15 + $0x18] sm:$0xff]  ;;  %v1139_v30 = vld [vmem:[%s2526_s15 + $0x10] sm:$0xff] }
 0x24f   : > { %v1144_v35 = vadd.f32 %v1140_v29, %v1136_v27  ;;  %v1143_v36 = vadd.f32 %v1139_v30, %v1135_v59 }
 0x250   : > { %v932_v49 = vmax.f32 %v924_v37, 0.0  ;;  %v933_v50 = vmax.f32 %v925_v38, 0.0 }
 0x251   : > { %v2426_v10 = vpop.permute.xlu1 %1010  ;;  %v1026_v37 = vpop.permute.xlu0 %1025 }
 0x252   : > { %v1735_v53 = vpack.c.bf16 %v932_v49, %v930_v47  ;;  %v1733_v54 = vpack.c.bf16 %v933_v50, %v931_v48 }
 0x254   : > { %1734 = vmatprep.subr.bf16.mxu0 %v1733_v54  ;;  %1754 = vmatprep.subr.bf16.mxu1 %v1733_v54 }
 0x255   : > { %1736 = vmatpush1.bf16.msra.mxu0 %v1735_v53  ;;  %1756 = vmatpush1.bf16.msra.mxu1 %v1735_v53  ;;  %v1261_v58 = vpop.permute.xlu1 %1260 }
 0x256   : > { %1738 = vmatprep.subr.bf16.mxu1 %v2214_v41  ;;  %1290 = vmatprep.subr.mxu0 %v2161_v13  ;;  %v1146_v13 = vld [vmem:[%s2525_s14 + $0x8] sm:$0xff] }
 0x258   : > { %1656 = vmatmul.mubr.msk.f32.vlgmr.msra.gmra.mrb[4].mxu0 %vm667_vm1, %v991_v63  ;;  %1658 = vmatmul.mubr.msk.f32.vlgmr.msra.gmra.mrb[8].mxu1 %vm667_vm1, %v993_v1  ;;  %v1424_v63 = vld [vmem:[%s2528_s17] sm:$0xf]  ;;  %v1276_v1 = vpop.permute.xlu0 %1275 }
 0x259   : > { %1740 = vmatpush3.bf16.msra.mxu1 %v2214_v41  ;;  %1110 = vmatprep.mubr.f32.mxu0 %v1957_v9  ;;  %v1250_v41 = vld [vmem:[%s2522_s11] sm:$0xff]  ;;  %v1021_v60 = vpop.permute.xlu1 %1020 }
 0x25a   : > { %1742 = vmatprep.subr.bf16.mxu1 %v2216_v42  ;;  %1122 = vmatprep.mubr.f32.mxu1 %v1957_v9 }
 0x25b   : > { %1291 = vmatpush1.msra.mxu0 %v2163_v14  ;;  %v1147_v14 = vld [vmem:[%s2525_s14 + $0x10] sm:$0xff] }
 0x25c   : > { %1657 = vmatmul.mubr.msk.f32.gmra.mrb[6].mxu0 %vm667_vm1, %v992_v4  ;;  %1659 = vmatmul.mubr.msk.f32.gmra.mrb[10].mxu1 %vm667_vm1, %v994_v5 }
 0x25d   : > { %1744 = vmatpush3.bf16.msra.mxu1 %v2216_v42  ;;  %1715 = vmatprep.mubr.msk.f32.mxu1 %vm667_vm1, %v1145_v26  ;;  %v1148_v42 = vld [vmem:[%s2525_s14 + $0x18] sm:$0xff]  ;;  %v1271_v46 = vpop.permute.xlu1 %1270 }
 0x25e   : > { %1354 = vmatprep.mubr.f32.mxu0 %v1957_v9 }
 0x260   : > { %1716 = vmatmul.mubr.msk.f32.vlgmr.msra.gmra.mrb[12].mxu1 %vm667_vm1, %v1146_v13  ;;  %1664 = vmatmul.mubr.msk.f32.vlgmr.msra.gmra.mrb[4].mxu0 %vm628_vm0, %v1250_v41  ;;  %v1763_v13 = vadd.f32 %v1266_v22, %v1016_v57  ;;  %v1757_v41 = vadd.f32 %v1261_v58, %v2426_v10 }
 0x261   : > { %1718 = vmatprep.mubr.msk.f32.mxu1 %vm667_vm1, %v1147_v14  ;;  %1360 = vmatprep.mubr.f32.mxu0 %v1957_v9 }
 0x264   : > { %1719 = vmatmul.mubr.msk.f32.gmra.mrb[14].mxu1 %vm667_vm1, %v1148_v42  ;;  %1665 = vmatmul.mubr.msk.f32.gmra.mrb[6].mxu0 %vm628_vm0, %v1251_v6 }
 0x265   : > { %1366 = vmatprep.mubr.f32.mxu0 %v1957_v9  ;;  %1497 = vmatprep.mubr.f32.mxu1 %v1957_v9 }
 0x268   : > { %1666 = vmatmul.mubr.msk.f32.gmra.mrb[8].mxu0 %vm628_vm0, %v1252_v7 }
 0x269   : > { %1372 = vmatprep.mubr.f32.mxu0 %v1957_v9 }
 0x26c   : > { %1667 = vmatmul.mubr.msk.f32.gmra.mrb[10].mxu0 %vm628_vm0, %v1253_v8 }
 0x32b   : > { %v1118_v56 = vpop.f32.mrb[8].mxu1 }
 0x32c   : > { %v1120_v9 = vpop.f32.mrb[9].mxu1  ;;  %v1119_v38 = vadd.f32 %v1118_v56, %v1021_v60 }
 0x32d   : > { %v1121_v39 = vadd.f32 %v1120_v9, %v1021_v60 }
 0x32e   : > { %v1770_v49 = vadd.f32 %v1271_v46, %v1119_v38 }
 0x32f   : > { %v1124_v20 = vpop.f32.mrb[10].mxu1  ;;  %v1774_v52 = vadd.f32 %v1271_v46, %v1121_v39 }
 0x330   : > { %v1126_v23 = vpop.f32.mrb[11].mxu1  ;;  %v1125_v48 = vadd.f32 %v1124_v20, %v1026_v37 }
 0x331   : > { %v1127_v50 = vadd.f32 %v1126_v23, %v1026_v37 }
 0x332   : > { %v1778_v21 = vadd.f32 %v1276_v1, %v1125_v48 }
 0x333   : > { %v1717_v31 = vpop.f32.mrb[12].mxu1  ;;  %v1356_v32 = vpop.f32.mrb[4].mxu0  ;;  %v1782_v3 = vadd.f32 %v1276_v1, %v1127_v50 }
 0x334   : > { %v1247_v33 = vadd.f32 %v1717_v31, %v1142_v25  ;;  %v1227_v61 = vpop.f32.mrb[13].mxu1  ;;  %v1358_v34 = vpop.f32.mrb[5].mxu0  ;;  %v1758_v6 = vadd.f32 %v1757_v41, %v1356_v32  ;;  %v1423_v31 = vld [vmem:[%s2527_s16] sm:$0xf] }
 0x335   : > { %v1246_v62 = vadd.f32 %v1227_v61, %v1141_v28  ;;  %v1761_v7 = vadd.f32 %v1757_v41, %v1358_v34 }
 0x336   : > { %1386 = vperm.xlu0 %1851, %v1247_v33  }
 0x337   : > { %1381 = vperm.xlu1 %1852, %v1246_v62   ;;  %v1720_v40 = vpop.f32.mrb[14].mxu1  ;;  %v1362_v0 = vpop.f32.mrb[6].mxu0 }
 0x338   : > { %v1249_v43 = vadd.f32 %v1720_v40, %v1144_v35  ;;  %v1237_v44 = vpop.f32.mrb[15].mxu1  ;;  %v1364_v45 = vpop.f32.mrb[7].mxu0  ;;  %v1764_v14 = vadd.f32 %v1763_v13, %v1362_v0 }
 0x339   : > { %v1248_v47 = vadd.f32 %v1237_v44, %v1143_v36  ;;  %v1767_v42 = vadd.f32 %v1763_v13, %v1364_v45 }
 0x33a   : > { %1396 = vperm.xlu0 %1851, %v1249_v43  }
 0x33b   : > { %1391 = vperm.xlu1 %1852, %v1248_v47   ;;  %v1368_v51 = vpop.f32.mrb[8].mxu0 }
 0x33c   : > { %v1771_v53 = vadd.f32 %v1770_v49, %v1368_v51  ;;  %v1370_v54 = vpop.f32.mrb[9].mxu0 }
 0x33d   : > { %v1775_v2 = vadd.f32 %v1774_v52, %v1370_v54 }
 0x33f   : > { %1427 = vperm.xlu1 %1852, %v1424_v63   ;;  %v1374_v24 = vpop.f32.mrb[10].mxu0 }
 0x340   : > { %v1779_v4 = vadd.f32 %v1778_v21, %v1374_v24  ;;  %v1376_v5 = vpop.f32.mrb[11].mxu0 }
 0x341   : > { %v1783_v26 = vadd.f32 %v1782_v3, %v1376_v5 }
 0x3b5   : > { %v1387_v8 = vpop.permute.xlu0 %1386 }
 0x3b6   : > { %v1765_v11 = vadd.f32 %v1764_v14, %v1387_v8  ;;  %v1768_v55 = vadd.f32 %v1767_v42, %v1387_v8  ;;  %v1382_v56 = vpop.permute.xlu1 %1381 }
 0x3b7   : > { %v1759_v9 = vadd.f32 %v1758_v6, %v1382_v56  ;;  %v1762_v12 = vadd.f32 %v1761_v7, %v1382_v56 }
 0x3b8   : > { %v1417_v15 = vmax.f32 %v1765_v11, 0.0  ;;  %v1418_v16 = vmax.f32 %v1768_v55, 0.0 }
 0x3b9   : > { %v1415_v17 = vmax.f32 %v1759_v9, 0.0  ;;  %v1416_v18 = vmax.f32 %v1762_v12, 0.0  ;;  %v1397_v19 = vpop.permute.xlu0 %1396 }
 0x3ba   : > { %v1780_v20 = vadd.f32 %v1779_v4, %v1397_v19  ;;  %v1784_v23 = vadd.f32 %v1783_v26, %v1397_v19  ;;  %v1392_v57 = vpop.permute.xlu1 %1391 }
 0x3bb   : > { %v1747_v22 = vpack.c.bf16 %v1417_v15, %v1415_v17  ;;  %v1772_v10 = vadd.f32 %v1771_v53, %v1392_v57  ;;  %v1776_v58 = vadd.f32 %v1775_v2, %v1392_v57  ;;  %v1745_v25 = vpack.c.bf16 %v1418_v16, %v1416_v18 }
 0x3bc   : > { %v1421_v27 = vmax.f32 %v1780_v20, 0.0  ;;  %v1422_v28 = vmax.f32 %v1784_v23, 0.0 }
 0x3bd   : > { %v1419_v29 = vmax.f32 %v1772_v10, 0.0  ;;  %v1420_v59 = vmax.f32 %v1776_v58, 0.0  ;;  %1746 = vmatprep.subr.bf16.mxu1 %v1745_v25 }
 0x3be   : > { %1748 = vmatpush1.bf16.msra.mxu1 %v1747_v22  ;;  %v1428_v32 = vpop.permute.xlu1 %1427 }
 0x3bf   : > { %v1751_v60 = vpack.c.bf16 %v1421_v27, %v1419_v29  ;;  %v1749_v30 = vpack.c.bf16 %v1422_v28, %v1420_v59 }
 0x3c1   : > { %1750 = vmatprep.subr.bf16.mxu1 %v1749_v30 }
 0x3c2   : > { %1752 = vmatpush1.bf16.msra.mxu1 %v1751_v60 }
 0x3c5   : > { %1668 = vmatmul.mubr.msk.f32.vlgmr.msra.gmra.mrb[16].mxu1 %vm667_vm1, %v1423_v31 }
 0x498   : > { %v1499_v33 = vpop.f32.mrb[16].mxu1 }
 0x499   : > { %v1500_v61 = vadd.f32 %v1499_v33, %v1428_v32  ;;  %v1501_v34 = vpop.f32.mrb[17].mxu1 }
 0x49a   : > { %v1502_v35 = vadd.f32 %v1501_v34, %v1428_v32 }
 0x49c   : > { %v1506_v62 = vcombine.low %v1500_v61, %v1502_v35 }
 0x49e   : > { %1508 = vst [vmem:[%s610_s21] sm:$0xff] %v1506_v62 }
 0x49f   : > { %1896 = shalt.err (!%p1893_p1)
}
 0x4a0   : > { %s1897_s23 = scalar_lea.hbm %s2469_s24, 128  ;;  %s1901_s21 = scalar_lea.hbm %s2529_s18, 256 }
 0x4a1   : > { %p1898_p2 = scmp.ne.s32.totalorder %s2469_s24, %s1897_s23  ;;  %p1902_p9 = scmp.lt.u32.totalorder %s2469_s24, %s2529_s18 }
 0x4a2   : > { %p1903_p5 = scmp.lt.u32.totalorder %s1901_s21, %s1897_s23  ;;  %p1905_p10 = scmp.lt.u32.totalorder %s1897_s23, %s2469_s24 }
 0x4a3   : > { %p1899_p3 = pnand %p1898_p2, %p2560_p12 }
 0x4a4   : > { %p1904_p6 = por %p1903_p5, %p1902_p9 }
 0x4a5   : > { %p1900_p4 = pneg %p1899_p3 }
 0x4a6   : > { %p1906_p0 = por %p1905_p10, %p1904_p6 }
 0x4a8   : > { %p1907_p7 = pnand %p1906_p0, %p1900_p4 }
 0x4aa   : > { %1910 = shalt.err (!%p1907_p7)
}
 0x4ab   : > { %1797 = dma.vmem_to_hbm [thread:$0]  (%p2560_p12), %s2471_s22, 128, %s2469_s24, %s1510_s26  }
 0x4ac PF: > { %s2561_s3 = sld [smem:[#allocation11_spill]]  ;;  %s2562_s0 = sld [smem:[#allocation15_spill]] }
 0x4ad   : > { %p1814_p8 = scmp.ge.s32.totalorder %s1953_s30, 2 }
 0x4b2   : > { %s1536_s20 = sand.u32 1, %s2561_s3   ;;  %p2563_p11 = scmp.ne.s32.totalorder %s2562_s0, 0 }
 0x4b3   : > { %s1537_s29 = scalar_lea.sflag [#allocation3], %s1536_s20 }
 0x4b4   : > { %p1807_p13 = pnand %p1814_p8, %p2563_p11 }
 0x4b6   : > { %1936 = dma.done.wait (!%p1807_p13), %s1537_s29, 128  }
 0x4b7   : > { %1938 = vsyncadd (!%p1807_p13), %s1537_s29, 4294967168  ;;  %s2564_s30 = sld [smem:[#allocation13_spill]]  ;;  %s2565_s23 = sld [smem:[#allocation12_spill]] }
 0x4b8   : > { %s2566_s29 = sld [smem:[#allocation14_spill]]  ;;  %s2567_s27 = smov %s1945_s28 }
 0x4bd   : > { %p30_p1 = scmp.ge.s32.totalorder %s2564_s30, 4   ;;  %s2568_s28 = smov %s2565_s23 }
 0x4bf   :  { %32 = sbr.rel (!%p30_p1) target bundleno = 10 (0xa), region = 143 }
 0x4c6   :  { %1542 = vsyncpa [#allocation3], 1 }
 0x4c7   :  { %1544 = vsyncpa [#allocation3 + $0x1], 1 }
 0x4c8   :  { %1545 = vsyncpa [#allocation4], 1 }
 0x4c9   :  { %1547 = vsyncpa [#allocation4 + $0x1], 1 }
 0x4ca   :  { %1548 = vsyncpa [#allocation6], 1 }

</bundles_post_ra>
